<compile_context>
chip_gen: v7x
topology: tpu7x:2x2x1
jax: 0.10.0
libtpu: 0.0.40
codegen_flags: <defaults>
</compile_context>

<pallas_src>
import functools

import jax
import jax.numpy as jnp
from jax.experimental import pallas as pl
from jax.experimental.pallas import tpu as pltpu


def _round_up(x: int, m: int) -> int:
    return ((x + m - 1) // m) * m


def _largest_divisor_leq(total: int, cap: int, mult: int = 1) -> int:
    """Largest divisor of `total` that is <= cap and a multiple of `mult`.
    Falls back to `total` (one full block) if none exists."""
    cap = min(cap, total)
    t = (cap // mult) * mult
    while t >= mult:
        if total % t == 0:
            return t
        t -= mult
    return total


def _vpu_has_bf16() -> bool:
    """v6e/v7x VPU+EUP have a bf16 path; v5e and earlier do not."""
    try:
        kind = jax.devices()[0].device_kind.lower()
        return not any(g in kind for g in ("v2", "v3", "v4", "v5"))
    except Exception:
        return False  # safe default: f32 everywhere


# ---------------------------------------------------------------------------
# Fused kernel. Per (batch-tile, patch-tile) grid step:
#     y = GELU(X @ We + be)               (bf16 MXU matmul, f32 accumulate)
#     acc[b, :] += sum_t y[b, t, :]       (reshape + middle-axis vector sum)
#   on the last patch tile:
#     out = (acc / N) @ Wh + bh           (lane-dense 128-wide logits)
# ---------------------------------------------------------------------------
def _fused_kernel(x_ref, we_ref, be_ref, wh_ref, bh_ref, o_ref, acc_ref, *,
                  inv_n, bf16_gelu):
    ni = pl.program_id(1)                     # reduction axis over patch tiles

    @pl.when(ni == 0)
    def _init():
        acc_ref[...] = jnp.zeros_like(acc_ref)

    tb, tn, k = x_ref.shape
    dp = we_ref.shape[1]

    # (tb, tn, K) -> (tb*tn, K): tile-aligned leading-dim merge; x is already
    # bf16 and K is unpadded (64) -- no cast, no pad, minimal DMA bytes.
    x = x_ref[...].reshape(tb * tn, k)

    # Patch embedding on the MXU (bf16 in, f32 accumulate) + resident bias.
    y = jnp.dot(x, we_ref[...], preferred_element_type=jnp.float32)
    y = y + be_ref[...]

    # GELU (tanh approximation). bf16 on v6e/v7x (bf16 VPU/EUP), f32 on v5e.
    if bf16_gelu:
        y = y.astype(jnp.bfloat16)
    y = 0.5 * y * (1.0 + jnp.tanh(0.7978845608028654 *
                                  (y + 0.044715 * (y * y * y))))

    # Per-batch pooled sum: reshape back to (tb, tn, Dp) (free leading-dim
    # split) and sum over the patch axis in f32 -- replaces the previous
    # iota/segment-mask matmul (saves VALU vregs and an f32 MXU emulation).
    acc_ref[...] += y.reshape(tb, tn, dp).astype(jnp.float32).sum(axis=1)

    # Finalize once: mean pool + classifier head, lane-dense (Cp = 128) store.
    @pl.when(ni == pl.num_programs(1) - 1)
    def _finalize():
        cp = o_ref.shape[-1]
        pooled = (acc_ref[...] * inv_n).astype(jnp.bfloat16)
        logits = jnp.dot(pooled, wh_ref[...], preferred_element_type=jnp.float32)
        o_ref[...] = (logits + bh_ref[...]).reshape(1, tb, cp)


def _fused_forward(patches, we, be, wh, bh):
    B, N, K = patches.shape
    Dp = we.shape[1]
    Cp = wh.shape[1]

    # Batch tile: ensure >= 2 grid steps along the "parallel" axis when B > 1
    # so both v7x TensorCores get work; cap at 8 and require exact division
    # (avoids tail-tile masking issues).
    if B <= 1:
        tb = 1
    else:
        tb = _largest_divisor_leq(B, min(8, B // 2), 1)

    # Patch tile: full N for small inputs; otherwise a large (<=2048) multiple
    # of 8 that divides N exactly. With bf16 / K=64 an 8x2048 tile is ~1 MiB,
    # well inside every generation's scoped-VMEM budget when double-buffered.
    tn = N if N <= 2048 else _largest_divisor_leq(N, 2048, 8)

    assert B % tb == 0 and N % tn == 0, "tile sizes must divide array dims"
    gb, gn = B // tb, N // tn
    grid = (gb, gn)

    bf16_gelu = _vpu_has_bf16()

    # Third input buffer once the grid is deep enough (hides residual DMA
    # latency at negligible VMEM cost after the bf16/unpadded-K shrink).
    x_spec_kwargs = {}
    if gb * gn >= 3:
        x_spec_kwargs = dict(pipeline_mode=pl.Buffered(3))
    x_spec = pl.BlockSpec((tb, tn, K), lambda bi, ni: (bi, ni, 0),
                          **x_spec_kwargs)

    itemsize = patches.dtype.itemsize
    cost = pl.CostEstimate(
        flops=2 * B * N * K * Dp + 2 * B * Dp * Cp,
        transcendentals=B * N * Dp,
        bytes_accessed=(patches.size * itemsize
                        + we.size * we.dtype.itemsize
                        + be.size * be.dtype.itemsize
                        + wh.size * wh.dtype.itemsize
                        + bh.size * bh.dtype.itemsize
                        + gb * tb * Cp * 4),
    )

    return pl.pallas_call(
        functools.partial(_fused_kernel, inv_n=float(1.0 / N),
                          bf16_gelu=bf16_gelu),
        # Output as (gb, tb, Cp): last two block dims always equal the full
        # array dims, so any tb (including 1) is layout-legal and lane-dense.
        out_shape=jax.ShapeDtypeStruct((gb, tb, Cp), jnp.float32),
        grid_spec=pltpu.PrefetchScalarGridSpec(
            num_scalar_prefetch=0,
            grid=grid,
            in_specs=[
                x_spec,
                pl.BlockSpec((K, Dp), lambda bi, ni: (0, 0)),   # resident We
                pl.BlockSpec((1, Dp), lambda bi, ni: (0, 0)),   # resident be
                pl.BlockSpec((Dp, Cp), lambda bi, ni: (0, 0)),  # resident Wh
                pl.BlockSpec((1, Cp), lambda bi, ni: (0, 0)),   # resident bh
            ],
            out_specs=pl.BlockSpec((1, tb, Cp), lambda bi, ni: (bi, 0, 0)),
            scratch_shapes=[pltpu.VMEM((tb, Dp), jnp.float32)],  # pooled sum
        ),
        compiler_params=pltpu.CompilerParams(
            dimension_semantics=("parallel", "arbitrary"),
            vmem_limit_bytes=32 * 1024 * 1024,
        ),
        cost_estimate=cost,
    )(patches, we, be, wh, bh)


class ModelWrapperPallas:
    """JAX/Pallas equivalent of vit_mutual.models.ModelWrapper wrapping a small
    synthetic patch-embed(+GELU) -> mean-pool -> linear-head module.
    Returns {'pred': logits} (ModelWrapper wraps non-dict outputs)."""

    def __init__(self, in_chans=4, patch=4, hidden=32, num_classes=10, seed=0):
        self.patch = patch
        self.hidden = hidden
        self.num_classes = num_classes

        k = jax.random.PRNGKey(seed)
        k1, k2, k3, k4 = jax.random.split(k, 4)
        kdim = in_chans * patch * patch

        w_embed = jax.random.normal(k1, (kdim, hidden), jnp.float32) * (1.0 / jnp.sqrt(kdim))
        b_embed = jax.random.normal(k2, (1, hidden), jnp.float32) * 0.02
        w_head = jax.random.normal(k3, (hidden, num_classes), jnp.float32) * (1.0 / jnp.sqrt(hidden))
        b_head = jax.random.normal(k4, (1, num_classes), jnp.float32) * 0.02

        # Lane-dense zero padding of the OUTPUT dims only: D -> Dp, C -> Cp
        # (multiples of 128). K stays unpadded (64) per the DMA-shrink change.
        # Zero-padded weights/biases + GELU(0)==0 keep the math exact; the
        # wrapper slices the head output back to [:, :num_classes].
        self.kdim = kdim
        self.dp = _round_up(hidden, 128)
        self.cp = _round_up(num_classes, 128)

        self.we_p = (jnp.zeros((kdim, self.dp), jnp.bfloat16)
                     .at[:, :hidden].set(w_embed.astype(jnp.bfloat16)))
        self.be_p = (jnp.zeros((1, self.dp), jnp.float32)
                     .at[:, :hidden].set(b_embed))
        self.wh_p = (jnp.zeros((self.dp, self.cp), jnp.bfloat16)
                     .at[:hidden, :num_classes].set(w_head.astype(jnp.bfloat16)))
        self.bh_p = (jnp.zeros((1, self.cp), jnp.float32)
                     .at[:, :num_classes].set(b_head))

    def _extract_patches(self, x):
        # Conv(k=s=P) as matmul: non-overlapping patch extraction (XLA glue),
        # emitted directly in bf16 and with K left unpadded.
        # TODO(synk): at ViT-scale inputs, fold patch extraction into the
        # kernel via index_map row gathers (or use NHWC) instead of
        # materializing the 6-D transpose in HBM.
        B, C, H, W = x.shape
        P = self.patch
        nH, nW = H // P, W // P
        p = x.reshape(B, C, nH, P, nW, P).transpose(0, 2, 4, 1, 3, 5)
        return p.reshape(B, nH * nW, C * P * P).astype(jnp.bfloat16)

    def __call__(self, x):
        patches = self._extract_patches(x)                        # [B, N, K] bf16
        B = patches.shape[0]
        logits_p = _fused_forward(patches, self.we_p, self.be_p,
                                  self.wh_p, self.bh_p)           # [gb, tb, Cp]
        output = logits_p.reshape(B, self.cp)[:, : self.num_classes]
        # ModelWrapper semantics: wrap non-dict output into {'pred': output}
        if isinstance(output, dict):
            return output
        return {"pred": output}


def _reference_forward(model, x):
    """Pure-JAX f32 reference using the same bf16-rounded parameters/inputs."""
    patches = model._extract_patches(x).astype(jnp.float32)
    y = patches @ model.we_p.astype(jnp.float32) + model.be_p
    c = 0.7978845608028654
    y = 0.5 * y * (1.0 + jnp.tanh(c * (y + 0.044715 * y ** 3)))
    pooled = y.mean(axis=1)
    logits = pooled @ model.wh_p.astype(jnp.float32) + model.bh_p
    return logits[:, : model.num_classes]


if __name__ == "__main__":
    key = jax.random.PRNGKey(0)
    x = jax.random.normal(key, (2, 4, 16, 16), jnp.float32)   # NCHW

    model = ModelWrapperPallas(in_chans=4, patch=4, hidden=32, num_classes=10, seed=0)
    out = model(x)
    assert isinstance(out, dict) and "pred" in out
    pred = jax.block_until_ready(out["pred"])
    assert pred.shape == (2, 10)

    ref = _reference_forward(model, x)
    max_err = float(jnp.max(jnp.abs(pred - ref)))
    assert jnp.allclose(pred, ref, atol=5e-2, rtol=5e-2), f"max abs err {max_err}"

    print("KERNEL_OK")
</pallas_src>

<mosaic_0001>
module attributes {stable_mosaic.version = 11 : i64} {
  func.func @_fused_kernel(%arg0: i32, %arg1: i32, %arg2: memref<1x16x64xbf16, #tpu.memory_space<vmem>>, %arg3: memref<64x128xbf16, #tpu.memory_space<vmem>>, %arg4: memref<1x128xf32, #tpu.memory_space<vmem>>, %arg5: memref<128x128xbf16, #tpu.memory_space<vmem>>, %arg6: memref<1x128xf32, #tpu.memory_space<vmem>>, %arg7: memref<1x1x128xf32, #tpu.memory_space<vmem>>, %arg8: memref<1x128xf32, #tpu.memory_space<vmem>>) attributes {dimension_semantics = [#tpu.dimension_semantics<parallel>, #tpu.dimension_semantics<arbitrary>], iteration_bounds = array<i64: 2, 1>, scalar_prefetch = 0 : i64, scratch_operands = 1 : i64, tpu.core_type = #tpu.core_type<tc>, window_params = [{transform_indices = @transform_0, window_bounds = array<i64: 1, 16, 64>}, {pipeline_mode = #tpu.pipeline_mode<synchronous>, transform_indices = @transform_1, window_bounds = array<i64: 64, 128>}, {pipeline_mode = #tpu.pipeline_mode<synchronous>, transform_indices = @transform_2, window_bounds = array<i64: 1, 128>}, {pipeline_mode = #tpu.pipeline_mode<synchronous>, transform_indices = @transform_3, window_bounds = array<i64: 128, 128>}, {pipeline_mode = #tpu.pipeline_mode<synchronous>, transform_indices = @transform_4, window_bounds = array<i64: 1, 128>}, {transform_indices = @transform_5, window_bounds = array<i64: 1, 1, 128>}]} {
    %c0_i32 = arith.constant 0 : i32
    %0 = arith.cmpi eq, %arg1, %c0_i32 : i32
    %1 = arith.extui %0 : i1 to i32
    %c0_i32_0 = arith.constant 0 : i32
    %2 = arith.cmpi ne, %1, %c0_i32_0 : i32
    scf.if %2 {
      %cst_18 = arith.constant 0.000000e+00 : f32
      %33 = vector.broadcast %cst_18 : f32 to vector<1x128xf32>
      %c0_19 = arith.constant 0 : index
      %c0_20 = arith.constant 0 : index
      %34 = vector.load %arg8[%c0_19, %c0_20] : memref<1x128xf32, #tpu.memory_space<vmem>>, vector<1x128xf32>
      tpu.vector_store %arg8[%c0_19, %c0_20], %33 {strides = array<i32>} : memref<1x128xf32, #tpu.memory_space<vmem>>, vector<1x128xf32>,
    } else {
    }
    %c0 = arith.constant 0 : index
    %c0_1 = arith.constant 0 : index
    %c0_2 = arith.constant 0 : index
    %3 = vector.load %arg2[%c0, %c0_1, %c0_2] : memref<1x16x64xbf16, #tpu.memory_space<vmem>>, vector<1x16x64xbf16>
    %4 = vector.shape_cast %3 : vector<1x16x64xbf16> to vector<16x64xbf16>
    %c0_3 = arith.constant 0 : index
    %c0_4 = arith.constant 0 : index
    %5 = vector.load %arg3[%c0_3, %c0_4] : memref<64x128xbf16, #tpu.memory_space<vmem>>, vector<64x128xbf16>
    %cst = arith.constant dense<0.000000e+00> : vector<16x128xf32>
    %6 = tpu.matmul %4, %5, %cst {dimension_numbers = #tpu.dot_dimension_numbers<[1], [0], [0], [1], [0, 0, 1, 1], [], []>} : vector<16x64xbf16>, vector<64x128xbf16>, vector<16x128xf32> -> vector<16x128xf32>
    %c0_5 = arith.constant 0 : index
    %c0_6 = arith.constant 0 : index
    %7 = vector.load %arg4[%c0_5, %c0_6] : memref<1x128xf32, #tpu.memory_space<vmem>>, vector<1x128xf32>
    %8 = vector.broadcast %7 : vector<1x128xf32> to vector<16x128xf32>
    %9 = arith.addf %6, %8 : vector<16x128xf32>
    %10 = arith.truncf %9 : vector<16x128xf32> to vector<16x128xbf16>
    %cst_7 = arith.constant 5.000000e-01 : bf16
    %11 = vector.broadcast %cst_7 : bf16 to vector<16x128xbf16>
    %12 = arith.mulf %11, %10 : vector<16x128xbf16>
    %13 = arith.mulf %10, %10 : vector<16x128xbf16>
    %14 = arith.mulf %13, %10 : vector<16x128xbf16>
    %cst_8 = arith.constant 4.467770e-02 : bf16
    %15 = vector.broadcast %cst_8 : bf16 to vector<16x128xbf16>
    %16 = arith.mulf %15, %14 : vector<16x128xbf16>
    %17 = arith.addf %10, %16 : vector<16x128xbf16>
    %cst_9 = arith.constant 7.968750e-01 : bf16
    %18 = vector.broadcast %cst_9 : bf16 to vector<16x128xbf16>
    %19 = arith.mulf %18, %17 : vector<16x128xbf16>
    %20 = math.tanh %19 : vector<16x128xbf16>
    %cst_10 = arith.constant 1.000000e+00 : bf16
    %21 = vector.broadcast %cst_10 : bf16 to vector<16x128xbf16>
    %22 = arith.addf %21, %20 : vector<16x128xbf16>
    %23 = arith.mulf %12, %22 : vector<16x128xbf16>
    %c0_11 = arith.constant 0 : index
    %c0_12 = arith.constant 0 : index
    %24 = vector.load %arg8[%c0_11, %c0_12] : memref<1x128xf32, #tpu.memory_space<vmem>>, vector<1x128xf32>
    %25 = vector.shape_cast %23 : vector<16x128xbf16> to vector<1x16x128xbf16>
    %26 = arith.extf %25 : vector<1x16x128xbf16> to vector<1x16x128xf32>
    %cst_13 = arith.constant dense<0.000000e+00> : vector<1x128xf32>
    %27 = vector.multi_reduction <add>, %26, %cst_13 [1] : vector<1x16x128xf32> to vector<1x128xf32>
    %28 = arith.addf %24, %27 : vector<1x128xf32>
    %c0_14 = arith.constant 0 : index
    %c0_15 = arith.constant 0 : index
    %29 = vector.load %arg8[%c0_14, %c0_15] : memref<1x128xf32, #tpu.memory_space<vmem>>, vector<1x128xf32>
    tpu.vector_store %arg8[%c0_14, %c0_15], %28 {strides = array<i32>} : memref<1x128xf32, #tpu.memory_space<vmem>>, vector<1x128xf32>,
    %c0_i32_16 = arith.constant 0 : i32
    %30 = arith.cmpi eq, %arg1, %c0_i32_16 : i32
    %31 = arith.extui %30 : i1 to i32
    %c0_i32_17 = arith.constant 0 : i32
    %32 = arith.cmpi ne, %31, %c0_i32_17 : i32
    scf.if %32 {
      %c0_18 = arith.constant 0 : index
      %c0_19 = arith.constant 0 : index
      %33 = vector.load %arg8[%c0_18, %c0_19] : memref<1x128xf32, #tpu.memory_space<vmem>>, vector<1x128xf32>
      %cst_20 = arith.constant 6.250000e-02 : f32
      %34 = vector.broadcast %cst_20 : f32 to vector<1x128xf32>
      %35 = arith.mulf %33, %34 : vector<1x128xf32>
      %36 = arith.truncf %35 : vector<1x128xf32> to vector<1x128xbf16>
      %c0_21 = arith.constant 0 : index
      %c0_22 = arith.constant 0 : index
      %37 = vector.load %arg5[%c0_21, %c0_22] : memref<128x128xbf16, #tpu.memory_space<vmem>>, vector<128x128xbf16>
      %cst_23 = arith.constant dense<0.000000e+00> : vector<1x128xf32>
      %38 = tpu.matmul %36, %37, %cst_23 {dimension_numbers = #tpu.dot_dimension_numbers<[1], [0], [0], [1], [0, 0, 1, 1], [], []>} : vector<1x128xbf16>, vector<128x128xbf16>, vector<1x128xf32> -> vector<1x128xf32>
      %c0_24 = arith.constant 0 : index
      %c0_25 = arith.constant 0 : index
      %39 = vector.load %arg6[%c0_24, %c0_25] : memref<1x128xf32, #tpu.memory_space<vmem>>, vector<1x128xf32>
      %40 = arith.addf %38, %39 : vector<1x128xf32>
      %41 = vector.shape_cast %40 : vector<1x128xf32> to vector<1x1x128xf32>
      %c0_26 = arith.constant 0 : index
      %c0_27 = arith.constant 0 : index
      %c0_28 = arith.constant 0 : index
      %42 = vector.load %arg7[%c0_26, %c0_27, %c0_28] : memref<1x1x128xf32, #tpu.memory_space<vmem>>, vector<1x1x128xf32>
      tpu.vector_store %arg7[%c0_26, %c0_27, %c0_28], %41 {strides = array<i32>} : memref<1x1x128xf32, #tpu.memory_space<vmem>>, vector<1x1x128xf32>,
    } else {
    }
    return
  }
  func.func @transform_0(%arg0: i32, %arg1: i32) -> (i32, i32, i32) {
    %c0_i32 = arith.constant 0 : i32
    %c0_i32_0 = arith.constant 0 : i32
    return %arg0, %arg1, %c0_i32 : i32, i32, i32
  }
  func.func @transform_1(%arg0: i32, %arg1: i32) -> (i32, i32) {
    %c0_i32 = arith.constant 0 : i32
    %c0_i32_0 = arith.constant 0 : i32
    %c0_i32_1 = arith.constant 0 : i32
    return %c0_i32, %c0_i32_0 : i32, i32
  }
  func.func @transform_2(%arg0: i32, %arg1: i32) -> (i32, i32) {
    %c0_i32 = arith.constant 0 : i32
    %c0_i32_0 = arith.constant 0 : i32
    %c0_i32_1 = arith.constant 0 : i32
    return %c0_i32, %c0_i32_0 : i32, i32
  }
  func.func @transform_3(%arg0: i32, %arg1: i32) -> (i32, i32) {
    %c0_i32 = arith.constant 0 : i32
    %c0_i32_0 = arith.constant 0 : i32
    %c0_i32_1 = arith.constant 0 : i32
    return %c0_i32, %c0_i32_0 : i32, i32
  }
  func.func @transform_4(%arg0: i32, %arg1: i32) -> (i32, i32) {
    %c0_i32 = arith.constant 0 : i32
    %c0_i32_0 = arith.constant 0 : i32
    %c0_i32_1 = arith.constant 0 : i32
    return %c0_i32, %c0_i32_0 : i32, i32
  }
  func.func @transform_5(%arg0: i32, %arg1: i32) -> (i32, i32, i32) {
    %c0_i32 = arith.constant 0 : i32
    %c0_i32_0 = arith.constant 0 : i32
    %c0_i32_1 = arith.constant 0 : i32
    return %arg0, %c0_i32, %c0_i32_0 : i32, i32, i32
  }
}

</mosaic_0001>

<bundles_post_ra>
// kernel: tpu_custom_call.1
= control target key start
LH: loop header
LB: loop body
LE: loop exit
PB: predicated region body
PF: predicated region fallthrough
CT: control target
= control target key end

     0   :  { %10 = vsyncpa [#allocation4], 0  ;;  %s1293_s0 = inlined_call_operand.hbm [shape: bf16[2,16,64], index: 0, kind: input, shape index: {}]   ;;  %s1294_s1 = inlined_call_operand.hbm [shape: bf16[64,128], index: 1, kind: input, shape index: {}]   ;;  %s1295_s2 = inlined_call_operand.vmem [shape: f32[1,128], index: 2, kind: input, shape index: {}]   ;;  %s1296_s3 = inlined_call_operand.hbm [shape: bf16[128,128], index: 3, kind: input, shape index: {}]   ;;  %s1297_s4 = inlined_call_operand.vmem [shape: f32[1,128], index: 4, kind: input, shape index: {}]   ;;  %s1298_s5 = inlined_call_operand.hbm [shape: f32[2,1,128], index: 5, kind: output, shape index: {}]  }
   0x1   :  { %12 = vsyncpa [#allocation4 + $0x1], 0 }
   0x2   :  { %13 = vsyncpa [#allocation7], 0 }
   0x3   :  { %14 = vsyncpa [#allocation5], 0 }
   0x4   :  { %16 = vsyncpa [#allocation5 + $0x1], 0  ;;  %s1024_s18 = smov 0   ;;  %s1026_s19 = smov 0  }
   0x5   :  { %s1028_s20 = smov 0   ;;  %s1030_s21 = smov 0  }
   0x6   :  { %s1032_s22 = smov 0   ;;  %s1034_s23 = smov 0  }
   0x7 LB: > { %s632_s24 = sadd.s32 4294967295, %s984_s23   ;;  %s633_s25 = sadd.s32 4294967294, %s984_s23   ;;  %s984_s23 = sphi %s1034_s23, %s22_s23   ;;  %s980_s22 = sphi %s1032_s22, %s1322_s22   ;;  %s976_s21 = sphi %s1030_s21, %s1321_s21   ;;  %s972_s20 = sphi %s1028_s20, %s1320_s20   ;;  %s968_s19 = sphi %s1026_s19, %s1319_s19   ;;  %s964_s18 = sphi %s1024_s18, %s1318_s18  }
   0x8   : > { %p56_p0 = scmp.ne.s32.totalorder %s968_s19, %s964_s18  ;;  %p1058_p1 = scmp.eq.s32.totalorder %s632_s24, 0 }
   0x9   : > { %p1062_p2 = scmp.eq.s32.totalorder %s632_s24, 1  ;;  %p170_p3 = scmp.eq.s32.totalorder %s633_s25, 1 }
   0xa   : > { %s1304_s26 = scalar_select %p1058_p1, 1, 0 }
   0xb   : > { %p1068_p4 = por %p1058_p1, %p56_p0  ;;  %p634_p5 = scmp.ge.s32.totalorder %s984_s23, 1 }
   0xc   : > { %p1073_p6 = por %p170_p3, %p56_p0  ;;  %p177_p7 = scmp.lt.s32.totalorder %s984_s23, 3 }
   0xd   : > { %s1306_s28 = scalar_select %p1068_p4, 1, 0 }
   0xe   : > { %s1307_s29 = scalar_select %p1073_p6, 1, 0 }
   0xf   : > { %p1078_p8 = pnand %p634_p5, %p177_p7  ;;  %s986_s6 = smov [#allocation6]  }
  0x10   : > { %s189_s7 = sshll.u32 %s986_s6, 4  ;;  %s987_s9 = smov [#allocation8]   ;;  %s1082_s7 = int_to_ptr.vmem [resolvable:$true] %s189_s7 }
  0x11   : > { %p722_p9 = pneg %p1078_p8  ;;  %s205_s10 = sshll.u32 %s987_s9, 4  ;;  %s1093_s10 = int_to_ptr.vmem [resolvable:$true] %s205_s10 }
  0x12   : > { %s812_s13 = scalar_lea.hbm %s1294_s1, 512 }
  0x13   : > { %p1089_p11 = pnand %p722_p9, %p1058_p1  ;;  %p813_p12 = scmp.ne.s32.totalorder %s1294_s1, %s812_s13 }
  0x14   : > { %p819_p5 = scmp.lt.u32.totalorder %s812_s13, %s1294_s1 }
  0x15   : > { %p814_p13 = pneg %p1089_p11 }
  0x17   : > { %p815_p0 = pnand %p814_p13, %p813_p12 }
  0x19   : > { %p816_p3 = pneg %p815_p0 }
  0x1b   : > { %p821_p7 = pnand %p819_p5, %p816_p3 }
  0x1d   : > { %824 = shalt.err (!%p821_p7)
}
  0x1e   : > { %s825_s24 = scalar_lea.vmem %s1082_s7, 512  ;;  %p833_p1 = scmp.lt.s32.totalorder %s1082_s7, %s1082_s7 }
  0x1f   : > { %p826_p9 = scmp.ne.s32.totalorder %s1082_s7, %s825_s24  ;;  %p834_p12 = scmp.lt.s32.totalorder %s825_s24, %s825_s24 }
  0x21   : > { %p828_p10 = pnand %p826_p9, %p814_p13  ;;  %p835_p0 = por %p834_p12, %p833_p1 }
  0x23   : > { %p829_p6 = pneg %p828_p10 }
  0x25   : > { %p836_p4 = pnand %p835_p0, %p829_p6 }
  0x27   : > { %839 = shalt.err (!%p836_p4)
}
  0x28   : > { %s1302_s25 = smov 64   ;;  %s989_s6 = smov 4  }
  0x29   : > { %725 = dma.hbm_to_vmem [thread:$0]  (!%p1089_p11), %s1294_s1, 512, %s1082_s7, [#allocation7], %s1302_s25, %s1302_s25, %s989_s6  }
  0x2a   : > { %s840_s14 = scalar_lea.hbm %s1296_s3, 1024 }
  0x2b   : > { %p841_p1 = scmp.ne.s32.totalorder %s1296_s3, %s840_s14  ;;  %p847_p10 = scmp.lt.u32.totalorder %s840_s14, %s1296_s3 }
  0x2d   : > { %p843_p4 = pnand %p841_p1, %p814_p13 }
  0x2f   : > { %p844_p6 = pneg %p843_p4 }
  0x31   : > { %p849_p3 = pnand %p847_p10, %p844_p6 }
  0x33   : > { %852 = shalt.err (!%p849_p3)
}
  0x34   : > { %s853_s7 = scalar_lea.vmem %s1093_s10, 1024  ;;  %p861_p12 = scmp.lt.s32.totalorder %s1093_s10, %s1093_s10 }
  0x35   : > { %p854_p5 = scmp.ne.s32.totalorder %s1093_s10, %s853_s7  ;;  %p862_p0 = scmp.lt.s32.totalorder %s853_s7, %s853_s7 }
  0x37   : > { %p856_p7 = pnand %p854_p5, %p814_p13  ;;  %p863_p1 = por %p862_p0, %p861_p12 }
  0x39   : > { %p857_p9 = pneg %p856_p7 }
  0x3b   : > { %p864_p4 = pnand %p863_p1, %p857_p9 }
  0x3d   : > { %867 = shalt.err (!%p864_p4)
}
  0x3e   : > { %728 = dma.hbm_to_vmem [thread:$0]  (!%p1089_p11), %s1296_s3, 1024, %s1093_s10, [#allocation7], %s1302_s25, %s1302_s25, %s989_s6  }
  0x3f   : > { %s34_s8 = sadd.s32 1, %s980_s22  ;;  %s43_s12 = sadd.s32 1, %s972_s20 }
  0x40   : > { %p36_p13 = scmp.ge.s32.totalorder %s34_s8, 2  ;;  %p50_p6 = scmp.ne.s32.totalorder %s972_s20, %s968_s19 }
  0x41   : > { %p51_p10 = scmp.eq.s32.totalorder %s984_s23, 0  ;;  %p739_p3 = scmp.lt.s32.totalorder %s984_s23, 2 }
  0x42   : > { %s1324_s8 = smov (%p36_p13, %s34_s8), 0  ;;  %p1163_p7 = por %p1062_p2, %p50_p6 }
  0x43   : > { %p52_p5 = por %p51_p10, %p50_p6  ;;  %s38_s14 = ssub.s32 %s980_s22, %s1324_s8 }
  0x44   : > { %s1310_s13 = scalar_select %p1163_p7, 1, 0 }
  0x45   : > { %s222_s15 = sand.u32 1, %s972_s20   ;;  %p41_p9 = scmp.eq.s32.totalorder %s38_s14, 0 }
  0x46   : > { %s638_s10 = sshll.u32 %s222_s15, 3  ;;  %s663_s16 = sshll.u32 %s980_s22, 7 }
  0x47   : > { %s1172_s17 = scalar_select %p41_p9, %s972_s20, %s43_s12  }
  0x48   : > { %s1177_s9 = scalar_lea.hbm %s1293_s0, %s663_s16  ;;  %s226_s27 = scalar_lea.vmem [#allocation3], %s638_s10 }
  0x49   : > { %s235_s11 = sshll.u32 %s226_s27, 4  ;;  %p1181_p2 = pnand %p739_p3, %p52_p5  ;;  %s1185_s11 = int_to_ptr.vmem [resolvable:$true] %s235_s11 }
  0x4a   : > { %s1187_s12 = scalar_lea.sflag [#allocation4], %s222_s15  ;;  %s868_s14 = scalar_lea.hbm %s1177_s9, 128 }
  0x4b   : > { %p869_p11 = scmp.ne.s32.totalorder %s1177_s9, %s868_s14  ;;  %p870_p12 = pneg %p1181_p2 }
  0x4c   : > { %s873_s24 = scalar_lea.hbm %s1293_s0, 256  ;;  %p874_p4 = scmp.lt.u32.totalorder %s1177_s9, %s1293_s0 }
  0x4d   : > { %p871_p0 = pnand %p870_p12, %p869_p11  ;;  %p875_p13 = scmp.lt.u32.totalorder %s873_s24, %s868_s14 }
  0x4e   : > { %p877_p10 = scmp.lt.u32.totalorder %s868_s14, %s1177_s9 }
  0x4f   : > { %p872_p1 = pneg %p871_p0  ;;  %p876_p6 = por %p875_p13, %p874_p4 }
  0x51   : > { %p878_p3 = por %p877_p10, %p876_p6 }
  0x53   : > { %p879_p5 = pnand %p878_p3, %p872_p1 }
  0x55   : > { %882 = shalt.err (!%p879_p5)
}
  0x56   : > { %s883_s15 = scalar_lea.vmem %s1185_s11, 128  ;;  %s990_s10 = smov [#allocation3]  }
  0x57   : > { %p884_p9 = scmp.ne.s32.totalorder %s1185_s11, %s883_s15  ;;  %s888_s16 = sshll.u32 %s990_s10, 4  ;;  %s889_s16 = int_to_ptr.vmem [resolvable:$false] %s888_s16 }
  0x58   : > { %s890_s7 = scalar_lea.vmem %s889_s16, 256  ;;  %p891_p7 = scmp.lt.s32.totalorder %s1185_s11, %s889_s16 }
  0x59   : > { %p886_p11 = pnand %p884_p9, %p870_p12  ;;  %p892_p4 = scmp.lt.s32.totalorder %s890_s7, %s883_s15 }
  0x5b   : > { %p887_p0 = pneg %p886_p11  ;;  %p893_p13 = por %p892_p4, %p891_p7 }
  0x5d   : > { %p894_p6 = pnand %p893_p13, %p887_p0 }
  0x5f   : > { %897 = shalt.err (!%p894_p6)
}
  0x60   : > { %s1312_s14 = smov 64   ;;  %247 = sbr.rel (%p1078_p8) target bundleno = 627 (0x273), region = 40 }
  0x61   : > { %732 = dma.hbm_to_vmem [thread:$0]  (!%p1181_p2), %s1177_s9, 128, %s1185_s11, %s1187_s12, %s1312_s14, %s1312_s14, %s989_s6  }
  0x62   : > { %s1221_s24 = sand.u32 (!%p1078_p8), 1, %s968_s19   ;;  %p1313_p7 = scmp.ne.s32.totalorder (!%p1078_p8), %s1306_s28, 0 }
  0x63   : > { %s642_s27 = sshll.u32 (!%p1078_p8), %s1221_s24, 3  ;;  %s250_s15 = scalar_lea.sflag (!%p1078_p8), [#allocation4], %s1221_s24 }
  0x64   : > { %s253_s10 = scalar_lea.vmem (!%p1078_p8), [#allocation3], %s642_s27 }
  0x67   : > { %951 = dma.done.wait (%p1313_p7), %s250_s15, 128  }
  0x68   : > { %953 = vsyncadd (%p1313_p7), %s250_s15, 4294967168  ;;  %p1314_p12 = scmp.ne.s32.totalorder %s1304_s26, 0 }
  0x6a   : > { %955 = dma.done.wait (%p1314_p12), [#allocation7], 1536  }
  0x6b   : > { %957 = vsyncadd (%p1314_p12), [#allocation7], 4294965760  ;;  %v991_v0 = vmov 0.0   ;;  %vm992_vm0 = vmmov 0   ;;  %v797_v1 = vld [vmem:[#allocation6] sm:$0xff]   ;;  %v798_v2 = vld [vmem:[#allocation6 + $0x8] sm:$0xff]  }
  0x6c   : > { %678 = vmatprep.subr.bf16.mxu0 %v991_v0  ;;  %297 = vst [vmem:[#allocation2] sm:$0x1] %v991_v0  ;;  %686 = vmatprep.mubr.msk.bf16.mxu0 %vm992_vm0, %v991_v0  ;;  %v799_v3 = vld [vmem:[#allocation6 + $0x10] sm:$0xff]   ;;  %v800_v4 = vld [vmem:[#allocation6 + $0x18] sm:$0xff]   ;;  %vm344_vm1 = vcmask 523264   ;;  %v802_v6 = vld [vmem:[#allocation8] sm:$0xff]  }
  0x6d   : > { %690 = vmatprep.subr.bf16.mxu1 %v991_v0  ;;  %706 = vmatprep.mubr.msk.bf16.mxu1 %vm992_vm0, %v991_v0  ;;  %v801_v5 = vld [vmem:[%s253_s10] sm:$0xff]   ;;  %v803_v7 = vld [vmem:[#allocation8 + $0x8] sm:$0xff]   ;;  %v806_v10 = vld [vmem:[#allocation8 + $0x20] sm:$0xff]   ;;  %s660_s6 = sshll.u32 %s976_s21, 4  ;;  %s286_s9 = scalar_lea.vmem [#allocation9], %s1221_s24 }
  0x6e   : > { %679 = vmatpush3.bf16.msra.mxu0 %v797_v1  ;;  %691 = vmatpush3.bf16.msra.mxu1 %v802_v6  ;;  %v804_v8 = vld [vmem:[#allocation8 + $0x10] sm:$0xff]   ;;  %v805_v9 = vld [vmem:[#allocation8 + $0x18] sm:$0xff]   ;;  %v807_v11 = vld [vmem:[#allocation8 + $0x28] sm:$0xff]   ;;  %s536_s11 = sshll.u32 %s286_s9, 4  ;;  %s1244_s7 = scalar_lea.hbm %s1298_s5, %s660_s6  ;;  %s1246_s11 = int_to_ptr.vmem [resolvable:$true] %s536_s11 }
  0x6f   : > { %680 = vmatprep.subr.bf16.mxu0 %v991_v0  ;;  %692 = vmatprep.subr.bf16.mxu1 %v991_v0  ;;  %v808_v12 = vld [vmem:[#allocation8 + $0x30] sm:$0xff]   ;;  %v809_v13 = vld [vmem:[#allocation8 + $0x38] sm:$0xff]   ;;  %v645_v14 = vld [vmem:[%s1295_s2] ss:$0 sm:$0xff]  ;;  %s524_s14 = scalar_lea.sflag [#allocation5], %s1221_s24  ;;  %s898_s21 = scalar_lea.vmem %s1246_s11, 16 }
  0x70   : > { %v433_v45 = vld [vmem:[%s1297_s4] sm:$0x1]  ;;  %p899_p8 = scmp.ne.s32.totalorder %s1246_s11, %s898_s21  ;;  %p1315_p2 = scmp.ne.s32.totalorder %s1310_s13, 0 }
  0x71   : > { %s993_s27 = smov [#allocation9]  }
  0x72   : > { %681 = vmatpush3.bf16.msra.mxu0 %v798_v2  ;;  %693 = vmatpush3.bf16.msra.mxu1 %v803_v7  ;;  %p900_p1 = pnand %p899_p8, %p1315_p2  ;;  %s902_s15 = sshll.u32 %s993_s27, 4  ;;  %s903_s15 = int_to_ptr.vmem [resolvable:$false] %s902_s15 }
  0x73   : > { %682 = vmatprep.subr.bf16.mxu0 %v991_v0  ;;  %694 = vmatprep.subr.bf16.mxu1 %v991_v0  ;;  %v399_v39 = vld [vmem:[#allocation2] sm:$0x1]  ;;  %s904_s10 = scalar_lea.vmem %s903_s15, 32  ;;  %p905_p3 = scmp.lt.s32.totalorder %s1246_s11, %s903_s15 }
  0x74   : > { %p901_p10 = pneg %p900_p1  ;;  %p906_p5 = scmp.lt.s32.totalorder %s904_s10, %s898_s21 }
  0x76   : > { %683 = vmatpush3.bf16.msra.mxu0 %v799_v3  ;;  %695 = vmatpush3.bf16.msra.mxu1 %v804_v8  ;;  %p907_p9 = por %p906_p5, %p905_p3 }
  0x77   : > { %684 = vmatprep.subr.bf16.mxu0 %v991_v0  ;;  %696 = vmatprep.subr.bf16.mxu1 %v991_v0 }
  0x78   : > { %p908_p11 = pnand %p907_p9, %p901_p10 }
  0x7a   : > { %685 = vmatpush3.bf16.msra.mxu0 %v800_v4  ;;  %697 = vmatpush3.bf16.msra.mxu1 %v805_v9 }
  0x7b   : > { %698 = vmatprep.subr.bf16.mxu1 %v991_v0 }
  0x7d   : > { %687 = vmatmul.mubr.msk.bf16.vlgmr.msra.gmra.mrb[0].mxu0 %vm344_vm1, %v801_v5 }
  0x7e   : > { %699 = vmatpush3.bf16.msra.mxu1 %v806_v10 }
  0x7f   : > { %700 = vmatprep.subr.bf16.mxu1 %v991_v0 }
  0x82   : > { %701 = vmatpush3.bf16.msra.mxu1 %v807_v11 }
  0x83   : > { %702 = vmatprep.subr.bf16.mxu1 %v991_v0 }
  0x86   : > { %703 = vmatpush3.bf16.msra.mxu1 %v808_v12 }
  0x87   : > { %704 = vmatprep.subr.bf16.mxu1 %v991_v0 }
  0x8a   : > { %705 = vmatpush3.bf16.msra.mxu1 %v809_v13 }
 0x150   : > { %v382_v15 = vpop.f32.mrb[0].mxu0 }
 0x151   : > { %v688_v16 = vpop.f32.mrb[1].mxu0  ;;  %v383_v18 = vadd.f32 %v645_v14, %v382_v15 }
 0x152   : > { %v385_v17 = vpop.f32.mrb[2].mxu0 }
 0x153   : > { %v386_v19 = vadd.f32 %v645_v14, %v385_v17  ;;  %v689_v20 = vpop.f32.mrb[3].mxu0 }
 0x155   : > { %v389_v21 = vpack.c.bf16 %v386_v19, %v383_v18 }
 0x157   : > { %v391_v22 = vmul.bf16 %v389_v21, %v389_v21  ;;  %v390_v28 = vmul.bf16 1056980736, %v389_v21 }
 0x159   : > { %v392_v23 = vmul.bf16 %v391_v22, %v389_v21 }
 0x15b   : > { %v393_v24 = vmul.bf16 1027030327, %v392_v23 }
 0x15d   : > { %v394_v25 = vadd.bf16 %v393_v24, %v389_v21 }
 0x15f   : > { %v395_v26 = vmul.bf16 1061961548, %v394_v25 }
 0x161   : > { %810 = vtanh.bf16 %v395_v26 }
 0x16c   : > { %v811_v27 = vpop.eup %810 }
 0x16d   : > { %v397_v29 = vadd.bf16 1065369472, %v811_v27 }
 0x16f   : > { %v398_v30 = vmul.bf16 %v397_v29, %v390_v28 }
 0x171   : > { %v400_v31 = vunpack.c.l.bf16 %v398_v30  ;;  %v401_v32 = vunpack.c.h.bf16 %v398_v30 }
 0x173   : > { %v402_v33 = vadd.f32 %v401_v32, %v400_v31 }
 0x175   : > { %v403_v34 = vrot.slane %v402_v33, 4 }
 0x177   : > { %v404_v35 = vadd.f32 %v403_v34, %v402_v33 }
 0x179   : > { %v405_v36 = vrot.slane %v404_v35, 2 }
 0x17b   : > { %v406_v37 = vadd.f32 %v405_v36, %v404_v35 }
 0x17d   : > { %v407_v38 = vrot.slane %v406_v37, 1 }
 0x17f   : > { %v408_v40 = vadd.f32 %v407_v38, %v406_v37 }
 0x181   : > { %v409_v41 = vadd.f32 %v408_v40, %v399_v39 }
 0x183   : > { %410 = vst [vmem:[#allocation2] sm:$0x1] %v409_v41 }
 0x18a   : > { %v414_v42 = vld [vmem:[#allocation2] sm:$0x1] }
 0x18b   : > { %v415_v43 = vmul.f32 0.0625, %v414_v42 }
 0x18d   : > { %v416_v44 = vpack.c.bf16 %v415_v43, %v415_v43 }
 0x18f   : > { %707 = vmatmul.mubr.bf16.vlgmr.msra.gmra.mrb[0].mxu1 %v416_v44 }
 0x262   : > { %v516_v46 = vpop.f32.mrb[0].mxu1 }
 0x263   : > { %v517_v47 = vadd.f32 %v516_v46, %v433_v45  ;;  %v708_v48 = vpop.f32.mrb[1].mxu1 }
 0x264   : > { %v519_v49 = vpop.f32.mrb[2].mxu1 }
 0x265   : > { %522 = vst [vmem:[%s286_s9] sm:$0x1] %v517_v47  ;;  %v709_v50 = vpop.f32.mrb[3].mxu1 }
 0x266   : > { %911 = shalt.err (!%p908_p11)
}
 0x267   : > { %s912_s24 = scalar_lea.hbm %s1244_s7, 16  ;;  %s916_s30 = scalar_lea.hbm %s1298_s5, 32 }
 0x268   : > { %p913_p0 = scmp.ne.s32.totalorder %s1244_s7, %s912_s24  ;;  %p917_p6 = scmp.lt.u32.totalorder %s1244_s7, %s1298_s5 }
 0x269   : > { %p918_p7 = scmp.lt.u32.totalorder %s916_s30, %s912_s24  ;;  %p920_p8 = scmp.lt.u32.totalorder %s912_s24, %s1244_s7 }
 0x26a   : > { %p914_p4 = pnand %p913_p0, %p1315_p2 }
 0x26b   : > { %p919_p12 = por %p918_p7, %p917_p6 }
 0x26c   : > { %p915_p13 = pneg %p914_p4 }
 0x26d   : > { %p921_p1 = por %p920_p8, %p919_p12 }
 0x26f   : > { %p922_p10 = pnand %p921_p1, %p915_p13 }
 0x271   : > { %925 = shalt.err (!%p922_p10)
}
 0x272   : > { %720 = dma.vmem_to_hbm [thread:$0]  (%p1315_p2), %s1246_s11, 16, %s1244_s7, %s524_s14  }
 0x273 PF: > { %s548_s9 = sand.u32 1, %s964_s18   ;;  %p1316_p3 = scmp.ne.s32.totalorder %s1307_s29, 0 }
 0x274   : > { %p1317_p5 = scmp.ge.s32.totalorder %s984_s23, 2  ;;  %s549_s12 = scalar_lea.sflag [#allocation5], %s548_s9 }
 0x276   : > { %p734_p9 = pnand %p1317_p5, %p1316_p3 }
 0x278   : > { %959 = dma.done.wait (!%p734_p9), %s549_s12, 16  }
 0x279   : > { %961 = vsyncadd (!%p734_p9), %s549_s12, 4294967280  ;;  %s22_s23 = sadd.s32 1, %s984_s23   ;;  %s1318_s18 = smov %s968_s19 }
 0x27a   : > { %p19_p11 = scmp.ge.s32.totalorder %s22_s23, 4   ;;  %s1319_s19 = smov %s972_s20 }
 0x27b   : > { %s1320_s20 = smov %s1172_s17  ;;  %s1321_s21 = smov %s980_s22 }
 0x27c   : > { %s1322_s22 = smov %s1324_s8  ;;  %21 = sbr.rel (!%p19_p11) target bundleno = 7 (0x7), region = 101 }
 0x283   :  { %553 = vsyncpa [#allocation4], 1 }
 0x284   :  { %555 = vsyncpa [#allocation4 + $0x1], 1 }
 0x285   :  { %556 = vsyncpa [#allocation7], 1 }
 0x286   :  { %557 = vsyncpa [#allocation5], 1 }
 0x287   :  { %559 = vsyncpa [#allocation5 + $0x1], 1 }

</bundles_post_ra>
